<compile_context>
chip_gen: v7x
topology: tpu7x:2x2x1
jax: 0.10.0
libtpu: 0.0.40
codegen_flags: <defaults>
</compile_context>

<pallas_src>
import functools

import jax
import jax.numpy as jnp
import numpy as np
from jax.experimental import pallas as pl
from jax.experimental.pallas import tpu as pltpu

_SUBLANE = 8
_LANE = 128
_MAX_TILE_B = 2048          # review: 2048-4096 rows amortizes ~0.35us/step
_SINGLE_TILE_MAX_B = 512    # below this, one grid step (overhead-bound regime)


def _round_up(x, m):
    return ((x + m - 1) // m) * m


def ffn_kernel(x_ref, w_in_ref, b_in_ref, w_h_ref, b_h_ref, w_out_ref,
               b_out_ref, out_ref, *, n_hidden):
    """Whole Net_FFN forward for one batch tile, fully resident in VMEM."""
    # Input layer: Linear + ReLU (f32 accumulation on the MXU).
    h = jnp.dot(x_ref[...], w_in_ref[...],
                preferred_element_type=jnp.float32) + b_in_ref[...]
    h = jnp.maximum(h, 0.0)

    # Residual hidden layers: h = relu(Linear(h)) + h, fused so only h and z
    # stay live. n_hidden is tiny & static -> static unroll is fine; for large
    # n_hidden switch to lax.fori_loop(..., unroll=True) over w_h_ref[l].
    for l in range(n_hidden):
        z = jnp.dot(h, w_h_ref[l],
                    preferred_element_type=jnp.float32) + b_h_ref[l]
        h = jnp.maximum(z, 0.0) + h

    # Output layer: Linear + Identity. n_out is padded only to 8 columns
    # (32 B/row writeback instead of 512 B/row with a 128-wide zero slab).
    out = jnp.dot(h, w_out_ref[...],
                  preferred_element_type=jnp.float32) + b_out_ref[...]
    out_ref[...] = out.astype(out_ref.dtype)


def net_ffn_forward(x, params, *, tile_b=None):
    """Wrapper: slim-pads the output columns, picks fat sublane-aligned batch
    tiles (>= 2 of them for large B, so both v7x TCs get work), pads ragged
    batches, and slices the result back to (B, n_out)."""
    w_in, b_in, w_h, b_h, w_out, b_out = params
    B, dim = x.shape
    width = w_in.shape[1]
    n_out = w_out.shape[1]
    n_hidden = w_h.shape[0]

    # --- slim output padding (review option (a), rounded to the f32 sublane
    # granule). Zero-padded columns are sliced off below. ---------------------
    n_out_pad = _round_up(n_out, _SUBLANE)
    if n_out_pad != n_out:
        w_out_p = jnp.pad(w_out, ((0, 0), (0, n_out_pad - n_out)))
        b_out_p = jnp.pad(b_out, ((0, 0), (0, n_out_pad - n_out)))
    else:
        w_out_p, b_out_p = w_out, b_out

    # --- batch tiling ---------------------------------------------------------
    B8 = _round_up(B, _SUBLANE)             # always sublane-align the batch
    if tile_b is None:
        if B8 <= _SINGLE_TILE_MAX_B:
            # Small batch: single grid step (per-step overhead dominates).
            tile_b = B8
        else:
            # Large batch: an EVEN number (>= 2) of fat tiles, each at most
            # _MAX_TILE_B rows and a multiple of 8, so the 'parallel' axis
            # shards across both v7x TensorCores while amortizing step cost.
            grid_b_target = 2 * pl.cdiv(B8, 2 * _MAX_TILE_B)
            tile_b = _round_up(pl.cdiv(B8, grid_b_target), _SUBLANE)
    else:
        tile_b = max(_SUBLANE, _round_up(min(int(tile_b), B8), _SUBLANE))

    B_pad = pl.cdiv(B, tile_b) * tile_b
    if B_pad != B:
        # Zero rows are harmless: no cross-row reductions in this forward.
        x = jnp.pad(x, ((0, B_pad - B), (0, 0)))
    grid_b = B_pad // tile_b

    kernel = functools.partial(ffn_kernel, n_hidden=n_hidden)
    itemsize = 4  # f32

    # --- VMEM budget (pass it explicitly; v5e scoped default is only 16 MiB) -
    weight_bytes = itemsize * (w_in.size + b_in.size + w_h.size + b_h.size
                               + w_out_p.size + b_out_p.size)
    io_bytes_per_buf = itemsize * tile_b * (dim + n_out_pad)
    live_act_bytes = 2 * itemsize * tile_b * width          # h and z temps
    needed = 2 * io_bytes_per_buf + 2 * weight_bytes + live_act_bytes
    vmem_limit = int(min(64 << 20, max(32 << 20, 2 * needed)))  # <= v7x VMEM

    # --- advisory cost estimate ----------------------------------------------
    flops = 2 * B_pad * (dim * width + n_hidden * width * width
                         + width * n_out_pad)
    bytes_accessed = itemsize * B_pad * (dim + n_out_pad) + weight_bytes
    cost = pl.CostEstimate(flops=int(flops), transcendentals=0,
                           bytes_accessed=int(bytes_accessed))

    def _run(single_buffer_weights):
        def const_spec(shape):
            zeros = (0,) * len(shape)
            if single_buffer_weights:
                # Constant index_map across the grid -> double-buffering these
                # is pure wasted VMEM; request a single buffer.
                return pl.BlockSpec(shape, lambda i, _z=zeros: _z,
                                    pipeline_mode=pl.Buffered(1))
            return pl.BlockSpec(shape, lambda i, _z=zeros: _z)

        in_specs = [
            pl.BlockSpec((tile_b, dim), lambda i: (i, 0)),          # x tile
            const_spec((dim, width)),                               # W_in
            const_spec((1, width)),                                 # b_in
            const_spec((n_hidden, width, width)),                   # W_h
            const_spec((n_hidden, 1, width)),                       # b_h
            const_spec((width, n_out_pad)),                         # W_out
            const_spec((1, n_out_pad)),                             # b_out
        ]
        out_specs = pl.BlockSpec((tile_b, n_out_pad), lambda i: (i, 0))

        return pl.pallas_call(
            kernel,
            out_shape=jax.ShapeDtypeStruct((B_pad, n_out_pad), x.dtype),
            grid_spec=pltpu.PrefetchScalarGridSpec(
                num_scalar_prefetch=0,
                grid=(grid_b,),
                in_specs=in_specs,
                out_specs=out_specs,
            ),
            compiler_params=pltpu.CompilerParams(
                dimension_semantics=("parallel",),
                vmem_limit_bytes=vmem_limit),
            cost_estimate=cost,
        )(x, w_in, b_in, w_h, b_h, w_out_p, b_out_p)

    try:
        out_padded = _run(True)
    except Exception:
        # Fallback for toolchains without pipeline_mode support on pallas_call
        # block specs: identical numerics, weights merely double-buffered
        # (negligible at these sizes).
        out_padded = _run(False)

    return out_padded[:B, :n_out]


def init_params(key, dim, n_out, n_layers, width):
    """Deterministic PyTorch-Linear-style init (uniform +-1/sqrt(fan_in))."""
    ks = jax.random.split(key, 6)

    def lin(k, fan_in, fan_out):
        kw, kb = jax.random.split(k)
        bound = 1.0 / np.sqrt(fan_in)
        w = jax.random.uniform(kw, (fan_in, fan_out), jnp.float32, -bound, bound)
        b = jax.random.uniform(kb, (1, fan_out), jnp.float32, -bound, bound)
        return w, b

    w_in, b_in = lin(ks[0], dim, width)
    n_hidden = n_layers - 1
    hs = [lin(k, width, width) for k in jax.random.split(ks[1], n_hidden)]
    w_h = jnp.stack([w for w, _ in hs])                 # (n_hidden, width, width)
    b_h = jnp.stack([b for _, b in hs])                 # (n_hidden, 1, width)
    w_out, b_out = lin(ks[2], width, n_out)
    return w_in, b_in, w_h, b_h, w_out, b_out


def reference_forward(x, params):
    """Pure-JAX reference mirroring the PyTorch module."""
    w_in, b_in, w_h, b_h, w_out, b_out = params
    h = jnp.maximum(x @ w_in + b_in, 0.0)
    for l in range(w_h.shape[0]):
        h = jnp.maximum(h @ w_h[l] + b_h[l], 0.0) + h
    return h @ w_out + b_out


if __name__ == "__main__":
    # Net_FFN(dim=4, nOut=2, n_layers=3, vNetWidth=32, activation='relu',
    #         activation_output='id', batchnorm=False)
    dim, n_out, n_layers, width = 4, 2, 3, 32

    key = jax.random.PRNGKey(0)
    k_x, k_p, k_x2 = jax.random.split(key, 3)
    params = init_params(k_p, dim, n_out, n_layers, width)

    # Check 1: small batch -> single grid step.
    x = jax.random.normal(k_x, (32, dim), jnp.float32)
    out = jax.block_until_ready(net_ffn_forward(x, params))
    ref = reference_forward(x, params)
    np.testing.assert_allclose(np.asarray(out), np.asarray(ref),
                               rtol=1e-5, atol=1e-5)

    # Check 2: ragged larger batch -> exercises padding + the >=2-tile path.
    x2 = jax.random.normal(k_x2, (1001, dim), jnp.float32)
    out2 = jax.block_until_ready(net_ffn_forward(x2, params))
    ref2 = reference_forward(x2, params)
    np.testing.assert_allclose(np.asarray(out2), np.asarray(ref2),
                               rtol=1e-5, atol=1e-5)

    print("KERNEL_OK")
</pallas_src>

<mosaic_0001>
module attributes {stable_mosaic.version = 11 : i64} {
  func.func @ffn_kernel(%arg0: i32, %arg1: memref<32x4xf32, #tpu.memory_space<vmem>>, %arg2: memref<4x32xf32, #tpu.memory_space<vmem>>, %arg3: memref<1x32xf32, #tpu.memory_space<vmem>>, %arg4: memref<2x32x32xf32, #tpu.memory_space<vmem>>, %arg5: memref<2x1x32xf32, #tpu.memory_space<vmem>>, %arg6: memref<32x8xf32, #tpu.memory_space<vmem>>, %arg7: memref<1x8xf32, #tpu.memory_space<vmem>>, %arg8: memref<32x8xf32, #tpu.memory_space<vmem>>) attributes {dimension_semantics = [#tpu.dimension_semantics<parallel>], iteration_bounds = array<i64: 1>, scalar_prefetch = 0 : i64, scratch_operands = 0 : i64, tpu.core_type = #tpu.core_type<tc>, window_params = [{transform_indices = @transform_0, window_bounds = array<i64: 32, 4>}, {pipeline_mode = #tpu.pipeline_mode<synchronous>, transform_indices = @transform_1, window_bounds = array<i64: 4, 32>}, {pipeline_mode = #tpu.pipeline_mode<synchronous>, transform_indices = @transform_2, window_bounds = array<i64: 1, 32>}, {pipeline_mode = #tpu.pipeline_mode<synchronous>, transform_indices = @transform_3, window_bounds = array<i64: 2, 32, 32>}, {pipeline_mode = #tpu.pipeline_mode<synchronous>, transform_indices = @transform_4, window_bounds = array<i64: 2, 1, 32>}, {pipeline_mode = #tpu.pipeline_mode<synchronous>, transform_indices = @transform_5, window_bounds = array<i64: 32, 8>}, {pipeline_mode = #tpu.pipeline_mode<synchronous>, transform_indices = @transform_6, window_bounds = array<i64: 1, 8>}, {transform_indices = @transform_7, window_bounds = array<i64: 32, 8>}]} {
    %c0 = arith.constant 0 : index
    %c0_0 = arith.constant 0 : index
    %0 = vector.load %arg1[%c0, %c0_0] : memref<32x4xf32, #tpu.memory_space<vmem>>, vector<32x4xf32>
    %c0_1 = arith.constant 0 : index
    %c0_2 = arith.constant 0 : index
    %1 = vector.load %arg2[%c0_1, %c0_2] : memref<4x32xf32, #tpu.memory_space<vmem>>, vector<4x32xf32>
    %cst = arith.constant dense<0.000000e+00> : vector<32x32xf32>
    %2 = tpu.matmul %0, %1, %cst {dimension_numbers = #tpu.dot_dimension_numbers<[1], [0], [0], [1], [0, 0, 1, 1], [], []>} : vector<32x4xf32>, vector<4x32xf32>, vector<32x32xf32> -> vector<32x32xf32>
    %c0_3 = arith.constant 0 : index
    %c0_4 = arith.constant 0 : index
    %3 = vector.load %arg3[%c0_3, %c0_4] : memref<1x32xf32, #tpu.memory_space<vmem>>, vector<1x32xf32>
    %4 = vector.broadcast %3 : vector<1x32xf32> to vector<32x32xf32>
    %5 = arith.addf %2, %4 : vector<32x32xf32>
    %cst_5 = arith.constant 0.000000e+00 : f32
    %6 = vector.broadcast %cst_5 : f32 to vector<32x32xf32>
    %7 = arith.maximumf %5, %6 : vector<32x32xf32>
    %c0_6 = arith.constant 0 : index
    %c0_7 = arith.constant 0 : index
    %c0_8 = arith.constant 0 : index
    %8 = vector.load %arg4[%c0_6, %c0_7, %c0_8] : memref<2x32x32xf32, #tpu.memory_space<vmem>>, vector<1x32x32xf32>
    %9 = vector.shape_cast %8 : vector<1x32x32xf32> to vector<32x32xf32>
    %cst_9 = arith.constant dense<0.000000e+00> : vector<32x32xf32>
    %10 = tpu.matmul %7, %9, %cst_9 {dimension_numbers = #tpu.dot_dimension_numbers<[1], [0], [0], [1], [0, 0, 1, 1], [], []>} : vector<32x32xf32>, vector<32x32xf32>, vector<32x32xf32> -> vector<32x32xf32>
    %c0_10 = arith.constant 0 : index
    %c0_11 = arith.constant 0 : index
    %c0_12 = arith.constant 0 : index
    %11 = vector.load %arg5[%c0_10, %c0_11, %c0_12] : memref<2x1x32xf32, #tpu.memory_space<vmem>>, vector<1x1x32xf32>
    %12 = vector.shape_cast %11 : vector<1x1x32xf32> to vector<1x32xf32>
    %13 = vector.broadcast %12 : vector<1x32xf32> to vector<32x32xf32>
    %14 = arith.addf %10, %13 : vector<32x32xf32>
    %cst_13 = arith.constant 0.000000e+00 : f32
    %15 = vector.broadcast %cst_13 : f32 to vector<32x32xf32>
    %16 = arith.maximumf %14, %15 : vector<32x32xf32>
    %17 = arith.addf %16, %7 : vector<32x32xf32>
    %c1 = arith.constant 1 : index
    %c0_14 = arith.constant 0 : index
    %c0_15 = arith.constant 0 : index
    %18 = vector.load %arg4[%c1, %c0_14, %c0_15] : memref<2x32x32xf32, #tpu.memory_space<vmem>>, vector<1x32x32xf32>
    %19 = vector.shape_cast %18 : vector<1x32x32xf32> to vector<32x32xf32>
    %cst_16 = arith.constant dense<0.000000e+00> : vector<32x32xf32>
    %20 = tpu.matmul %17, %19, %cst_16 {dimension_numbers = #tpu.dot_dimension_numbers<[1], [0], [0], [1], [0, 0, 1, 1], [], []>} : vector<32x32xf32>, vector<32x32xf32>, vector<32x32xf32> -> vector<32x32xf32>
    %c1_17 = arith.constant 1 : index
    %c0_18 = arith.constant 0 : index
    %c0_19 = arith.constant 0 : index
    %21 = vector.load %arg5[%c1_17, %c0_18, %c0_19] : memref<2x1x32xf32, #tpu.memory_space<vmem>>, vector<1x1x32xf32>
    %22 = vector.shape_cast %21 : vector<1x1x32xf32> to vector<1x32xf32>
    %23 = vector.broadcast %22 : vector<1x32xf32> to vector<32x32xf32>
    %24 = arith.addf %20, %23 : vector<32x32xf32>
    %cst_20 = arith.constant 0.000000e+00 : f32
    %25 = vector.broadcast %cst_20 : f32 to vector<32x32xf32>
    %26 = arith.maximumf %24, %25 : vector<32x32xf32>
    %27 = arith.addf %26, %17 : vector<32x32xf32>
    %c0_21 = arith.constant 0 : index
    %c0_22 = arith.constant 0 : index
    %28 = vector.load %arg6[%c0_21, %c0_22] : memref<32x8xf32, #tpu.memory_space<vmem>>, vector<32x8xf32>
    %cst_23 = arith.constant dense<0.000000e+00> : vector<32x8xf32>
    %29 = tpu.matmul %27, %28, %cst_23 {dimension_numbers = #tpu.dot_dimension_numbers<[1], [0], [0], [1], [0, 0, 1, 1], [], []>} : vector<32x32xf32>, vector<32x8xf32>, vector<32x8xf32> -> vector<32x8xf32>
    %c0_24 = arith.constant 0 : index
    %c0_25 = arith.constant 0 : index
    %30 = vector.load %arg7[%c0_24, %c0_25] : memref<1x8xf32, #tpu.memory_space<vmem>>, vector<1x8xf32>
    %31 = vector.broadcast %30 : vector<1x8xf32> to vector<32x8xf32>
    %32 = arith.addf %29, %31 : vector<32x8xf32>
    %c0_26 = arith.constant 0 : index
    %c0_27 = arith.constant 0 : index
    %33 = vector.load %arg8[%c0_26, %c0_27] : memref<32x8xf32, #tpu.memory_space<vmem>>, vector<32x8xf32>
    tpu.vector_store %arg8[%c0_26, %c0_27], %32 {strides = array<i32>} : memref<32x8xf32, #tpu.memory_space<vmem>>, vector<32x8xf32>,
    return
  }
  func.func @transform_0(%arg0: i32) -> (i32, i32) {
    %c0_i32 = arith.constant 0 : i32
    %c0_i32_0 = arith.constant 0 : i32
    return %arg0, %c0_i32 : i32, i32
  }
  func.func @transform_1(%arg0: i32) -> (i32, i32) {
    %c0_i32 = arith.constant 0 : i32
    %c0_i32_0 = arith.constant 0 : i32
    %c0_i32_1 = arith.constant 0 : i32
    return %c0_i32, %c0_i32_0 : i32, i32
  }
  func.func @transform_2(%arg0: i32) -> (i32, i32) {
    %c0_i32 = arith.constant 0 : i32
    %c0_i32_0 = arith.constant 0 : i32
    %c0_i32_1 = arith.constant 0 : i32
    return %c0_i32, %c0_i32_0 : i32, i32
  }
  func.func @transform_3(%arg0: i32) -> (i32, i32, i32) {
    %c0_i32 = arith.constant 0 : i32
    %c0_i32_0 = arith.constant 0 : i32
    %c0_i32_1 = arith.constant 0 : i32
    %c0_i32_2 = arith.constant 0 : i32
    return %c0_i32, %c0_i32_0, %c0_i32_1 : i32, i32, i32
  }
  func.func @transform_4(%arg0: i32) -> (i32, i32, i32) {
    %c0_i32 = arith.constant 0 : i32
    %c0_i32_0 = arith.constant 0 : i32
    %c0_i32_1 = arith.constant 0 : i32
    %c0_i32_2 = arith.constant 0 : i32
    return %c0_i32, %c0_i32_0, %c0_i32_1 : i32, i32, i32
  }
  func.func @transform_5(%arg0: i32) -> (i32, i32) {
    %c0_i32 = arith.constant 0 : i32
    %c0_i32_0 = arith.constant 0 : i32
    %c0_i32_1 = arith.constant 0 : i32
    return %c0_i32, %c0_i32_0 : i32, i32
  }
  func.func @transform_6(%arg0: i32) -> (i32, i32) {
    %c0_i32 = arith.constant 0 : i32
    %c0_i32_0 = arith.constant 0 : i32
    %c0_i32_1 = arith.constant 0 : i32
    return %c0_i32, %c0_i32_0 : i32, i32
  }
  func.func @transform_7(%arg0: i32) -> (i32, i32) {
    %c0_i32 = arith.constant 0 : i32
    %c0_i32_0 = arith.constant 0 : i32
    return %arg0, %c0_i32 : i32, i32
  }
}

module attributes {stable_mosaic.version = 11 : i64} {
  func.func @ffn_kernel(%arg0: i32, %arg1: memref<32x4xf32, #tpu.memory_space<vmem>>, %arg2: memref<4x32xf32, #tpu.memory_space<vmem>>, %arg3: memref<1x32xf32, #tpu.memory_space<vmem>>, %arg4: memref<2x32x32xf32, #tpu.memory_space<vmem>>, %arg5: memref<2x1x32xf32, #tpu.memory_space<vmem>>, %arg6: memref<32x8xf32, #tpu.memory_space<vmem>>, %arg7: memref<1x8xf32, #tpu.memory_space<vmem>>, %arg8: memref<32x8xf32, #tpu.memory_space<vmem>>) attributes {dimension_semantics = [#tpu.dimension_semantics<parallel>], iteration_bounds = array<i64: 1>, scalar_prefetch = 0 : i64, scratch_operands = 0 : i64, tpu.core_type = #tpu.core_type<tc>, window_params = [{transform_indices = @transform_0, window_bounds = array<i64: 32, 4>}, {pipeline_mode = #tpu.pipeline_mode<synchronous>, transform_indices = @transform_1, window_bounds = array<i64: 4, 32>}, {pipeline_mode = #tpu.pipeline_mode<synchronous>, transform_indices = @transform_2, window_bounds = array<i64: 1, 32>}, {pipeline_mode = #tpu.pipeline_mode<synchronous>, transform_indices = @transform_3, window_bounds = array<i64: 2, 32, 32>}, {pipeline_mode = #tpu.pipeline_mode<synchronous>, transform_indices = @transform_4, window_bounds = array<i64: 2, 1, 32>}, {pipeline_mode = #tpu.pipeline_mode<synchronous>, transform_indices = @transform_5, window_bounds = array<i64: 32, 8>}, {pipeline_mode = #tpu.pipeline_mode<synchronous>, transform_indices = @transform_6, window_bounds = array<i64: 1, 8>}, {transform_indices = @transform_7, window_bounds = array<i64: 32, 8>}]} {
    %c0 = arith.constant 0 : index
    %c0_0 = arith.constant 0 : index
    %0 = vector.load %arg1[%c0, %c0_0] : memref<32x4xf32, #tpu.memory_space<vmem>>, vector<32x4xf32>
    %c0_1 = arith.constant 0 : index
    %c0_2 = arith.constant 0 : index
    %1 = vector.load %arg2[%c0_1, %c0_2] : memref<4x32xf32, #tpu.memory_space<vmem>>, vector<4x32xf32>
    %cst = arith.constant dense<0.000000e+00> : vector<32x32xf32>
    %2 = tpu.matmul %0, %1, %cst {dimension_numbers = #tpu.dot_dimension_numbers<[1], [0], [0], [1], [0, 0, 1, 1], [], []>} : vector<32x4xf32>, vector<4x32xf32>, vector<32x32xf32> -> vector<32x32xf32>
    %c0_3 = arith.constant 0 : index
    %c0_4 = arith.constant 0 : index
    %3 = vector.load %arg3[%c0_3, %c0_4] : memref<1x32xf32, #tpu.memory_space<vmem>>, vector<1x32xf32>
    %4 = vector.broadcast %3 : vector<1x32xf32> to vector<32x32xf32>
    %5 = arith.addf %2, %4 : vector<32x32xf32>
    %cst_5 = arith.constant 0.000000e+00 : f32
    %6 = vector.broadcast %cst_5 : f32 to vector<32x32xf32>
    %7 = arith.maximumf %5, %6 : vector<32x32xf32>
    %c0_6 = arith.constant 0 : index
    %c0_7 = arith.constant 0 : index
    %c0_8 = arith.constant 0 : index
    %8 = vector.load %arg4[%c0_6, %c0_7, %c0_8] : memref<2x32x32xf32, #tpu.memory_space<vmem>>, vector<1x32x32xf32>
    %9 = vector.shape_cast %8 : vector<1x32x32xf32> to vector<32x32xf32>
    %cst_9 = arith.constant dense<0.000000e+00> : vector<32x32xf32>
    %10 = tpu.matmul %7, %9, %cst_9 {dimension_numbers = #tpu.dot_dimension_numbers<[1], [0], [0], [1], [0, 0, 1, 1], [], []>} : vector<32x32xf32>, vector<32x32xf32>, vector<32x32xf32> -> vector<32x32xf32>
    %c0_10 = arith.constant 0 : index
    %c0_11 = arith.constant 0 : index
    %c0_12 = arith.constant 0 : index
    %11 = vector.load %arg5[%c0_10, %c0_11, %c0_12] : memref<2x1x32xf32, #tpu.memory_space<vmem>>, vector<1x1x32xf32>
    %12 = vector.shape_cast %11 : vector<1x1x32xf32> to vector<1x32xf32>
    %13 = vector.broadcast %12 : vector<1x32xf32> to vector<32x32xf32>
    %14 = arith.addf %10, %13 : vector<32x32xf32>
    %cst_13 = arith.constant 0.000000e+00 : f32
    %15 = vector.broadcast %cst_13 : f32 to vector<32x32xf32>
    %16 = arith.maximumf %14, %15 : vector<32x32xf32>
    %17 = arith.addf %16, %7 : vector<32x32xf32>
    %c1 = arith.constant 1 : index
    %c0_14 = arith.constant 0 : index
    %c0_15 = arith.constant 0 : index
    %18 = vector.load %arg4[%c1, %c0_14, %c0_15] : memref<2x32x32xf32, #tpu.memory_space<vmem>>, vector<1x32x32xf32>
    %19 = vector.shape_cast %18 : vector<1x32x32xf32> to vector<32x32xf32>
    %cst_16 = arith.constant dense<0.000000e+00> : vector<32x32xf32>
    %20 = tpu.matmul %17, %19, %cst_16 {dimension_numbers = #tpu.dot_dimension_numbers<[1], [0], [0], [1], [0, 0, 1, 1], [], []>} : vector<32x32xf32>, vector<32x32xf32>, vector<32x32xf32> -> vector<32x32xf32>
    %c1_17 = arith.constant 1 : index
    %c0_18 = arith.constant 0 : index
    %c0_19 = arith.constant 0 : index
    %21 = vector.load %arg5[%c1_17, %c0_18, %c0_19] : memref<2x1x32xf32, #tpu.memory_space<vmem>>, vector<1x1x32xf32>
    %22 = vector.shape_cast %21 : vector<1x1x32xf32> to vector<1x32xf32>
    %23 = vector.broadcast %22 : vector<1x32xf32> to vector<32x32xf32>
    %24 = arith.addf %20, %23 : vector<32x32xf32>
    %cst_20 = arith.constant 0.000000e+00 : f32
    %25 = vector.broadcast %cst_20 : f32 to vector<32x32xf32>
    %26 = arith.maximumf %24, %25 : vector<32x32xf32>
    %27 = arith.addf %26, %17 : vector<32x32xf32>
    %c0_21 = arith.constant 0 : index
    %c0_22 = arith.constant 0 : index
    %28 = vector.load %arg6[%c0_21, %c0_22] : memref<32x8xf32, #tpu.memory_space<vmem>>, vector<32x8xf32>
    %cst_23 = arith.constant dense<0.000000e+00> : vector<32x8xf32>
    %29 = tpu.matmul %27, %28, %cst_23 {dimension_numbers = #tpu.dot_dimension_numbers<[1], [0], [0], [1], [0, 0, 1, 1], [], []>} : vector<32x32xf32>, vector<32x8xf32>, vector<32x8xf32> -> vector<32x8xf32>
    %c0_24 = arith.constant 0 : index
    %c0_25 = arith.constant 0 : index
    %30 = vector.load %arg7[%c0_24, %c0_25] : memref<1x8xf32, #tpu.memory_space<vmem>>, vector<1x8xf32>
    %31 = vector.broadcast %30 : vector<1x8xf32> to vector<32x8xf32>
    %32 = arith.addf %29, %31 : vector<32x8xf32>
    %c0_26 = arith.constant 0 : index
    %c0_27 = arith.constant 0 : index
    %33 = vector.load %arg8[%c0_26, %c0_27] : memref<32x8xf32, #tpu.memory_space<vmem>>, vector<32x8xf32>
    tpu.vector_store %arg8[%c0_26, %c0_27], %32 {strides = array<i32>} : memref<32x8xf32, #tpu.memory_space<vmem>>, vector<32x8xf32>,
    return
  }
  func.func @transform_0(%arg0: i32) -> (i32, i32) {
    %c0_i32 = arith.constant 0 : i32
    %c0_i32_0 = arith.constant 0 : i32
    return %arg0, %c0_i32 : i32, i32
  }
  func.func @transform_1(%arg0: i32) -> (i32, i32) {
    %c0_i32 = arith.constant 0 : i32
    %c0_i32_0 = arith.constant 0 : i32
    %c0_i32_1 = arith.constant 0 : i32
    return %c0_i32, %c0_i32_0 : i32, i32
  }
  func.func @transform_2(%arg0: i32) -> (i32, i32) {
    %c0_i32 = arith.constant 0 : i32
    %c0_i32_0 = arith.constant 0 : i32
    %c0_i32_1 = arith.constant 0 : i32
    return %c0_i32, %c0_i32_0 : i32, i32
  }
  func.func @transform_3(%arg0: i32) -> (i32, i32, i32) {
    %c0_i32 = arith.constant 0 : i32
    %c0_i32_0 = arith.constant 0 : i32
    %c0_i32_1 = arith.constant 0 : i32
    %c0_i32_2 = arith.constant 0 : i32
    return %c0_i32, %c0_i32_0, %c0_i32_1 : i32, i32, i32
  }
  func.func @transform_4(%arg0: i32) -> (i32, i32, i32) {
    %c0_i32 = arith.constant 0 : i32
    %c0_i32_0 = arith.constant 0 : i32
    %c0_i32_1 = arith.constant 0 : i32
    %c0_i32_2 = arith.constant 0 : i32
    return %c0_i32, %c0_i32_0, %c0_i32_1 : i32, i32, i32
  }
  func.func @transform_5(%arg0: i32) -> (i32, i32) {
    %c0_i32 = arith.constant 0 : i32
    %c0_i32_0 = arith.constant 0 : i32
    %c0_i32_1 = arith.constant 0 : i32
    return %c0_i32, %c0_i32_0 : i32, i32
  }
  func.func @transform_6(%arg0: i32) -> (i32, i32) {
    %c0_i32 = arith.constant 0 : i32
    %c0_i32_0 = arith.constant 0 : i32
    %c0_i32_1 = arith.constant 0 : i32
    return %c0_i32, %c0_i32_0 : i32, i32
  }
  func.func @transform_7(%arg0: i32) -> (i32, i32) {
    %c0_i32 = arith.constant 0 : i32
    %c0_i32_0 = arith.constant 0 : i32
    return %arg0, %c0_i32 : i32, i32
  }
}

</mosaic_0001>

<bundles_post_ra>
// kernel: tpu_custom_call.1
= control target key start
LH: loop header
LB: loop body
LE: loop exit
PB: predicated region body
PF: predicated region fallthrough
CT: control target
= control target key end

     0   :  { %vm51_vm0 = vcmask 1043456   ;;  %vm38_vm1 = vcmask 31744   ;;  %vm155_vm2 = vcmask 261120   ;;  %vm487_vm3 = vcmask 64512   ;;  %s760_s1 = inlined_call_operand.vmem [shape: f32[4,32], index: 1, kind: input, shape index: {}]   ;;  %s761_s0 = inlined_call_operand.vmem [shape: f32[32,4], index: 0, kind: input, shape index: {}]   ;;  %s762_s3 = inlined_call_operand.vmem [shape: f32[2,32,32], index: 3, kind: input, shape index: {}]   ;;  %s763_s2 = inlined_call_operand.vmem [shape: f32[1,32], index: 2, kind: input, shape index: {}]   ;;  %s764_s4 = inlined_call_operand.vmem [shape: f32[2,1,32], index: 4, kind: input, shape index: {}]   ;;  %s765_s5 = inlined_call_operand.vmem [shape: f32[32,8], index: 5, kind: input, shape index: {}]   ;;  %s766_s6 = inlined_call_operand.vmem [shape: f32[1,8], index: 6, kind: input, shape index: {}]   ;;  %s767_s7 = inlined_call_operand.vmem [shape: f32[32,8], index: 7, kind: output, shape index: {}]  }
   0x1   :  { %v30_v0 = vld [vmem:[%s760_s1] sm:$0xf]  ;;  %v27_v2 = vld [vmem:[%s761_s0 + $0x8] sm:$0xff]  ;;  %v28_v3 = vld [vmem:[%s761_s0 + $0x10] sm:$0xff] }
   0x2   :  { %v26_v1 = vld [vmem:[%s761_s0] sm:$0xff]  ;;  %551 = vmatprep.subr.msk.mxu0 %vm51_vm0, %v30_v0  ;;  %v145_v5 = vld [vmem:[%s762_s3 + $0x8] sm:$0xff]  ;;  %v29_v7 = vld [vmem:[%s761_s0 + $0x18] sm:$0xff] }
   0x3   :  { %553 = vmatprep.mubr.msk.f32.mxu0 %vm38_vm1, %v26_v1  ;;  %v144_v4 = vld [vmem:[%s762_s3] sm:$0xff]  ;;  %552 = vmatpush3.msk.msra.mxu0 %vm51_vm0, %v30_v0  ;;  %v146_v8 = vld [vmem:[%s762_s3 + $0x10] sm:$0xff]  ;;  %v147_v9 = vld [vmem:[%s762_s3 + $0x18] sm:$0xff] }
   0x4   :  { %554 = vmatmul.mubr.msk.f32.vlgmr.msra.gmra.mrb[0].mxu0 %vm38_vm1, %v27_v2  ;;  %v601_v6 = vpack.c.bf16 %v145_v5, %v144_v4  ;;  %v605_v10 = vpack.c.bf16 %v147_v9, %v146_v8  ;;  %v496_v11 = vld [vmem:[%s763_s2] ss:$0 sm:$0xff]  ;;  %v508_v25 = vld [vmem:[%s762_s3 + $0x28] sm:$0xff]  ;;  %v509_v27 = vld [vmem:[%s762_s3 + $0x30] sm:$0xff] }
   0x5   :  { %556 = vmatprep.mubr.msk.f32.mxu0 %vm38_vm1, %v28_v3  ;;  %v507_v24 = vld [vmem:[%s762_s3 + $0x20] sm:$0xff]  ;;  %v510_v28 = vld [vmem:[%s762_s3 + $0x38] sm:$0xff]  ;;  %v380_v48 = vld [vmem:[%s765_s5 + $0x8] sm:$0xff] }
   0x6   :  { %602 = vmatprep.subr.bf16.mxu1 %v601_v6  ;;  %v609_v26 = vpack.c.bf16 %v508_v25, %v507_v24  ;;  %v613_v29 = vpack.c.bf16 %v510_v28, %v509_v27  ;;  %v502_v30 = vld [vmem:[%s764_s4] ss:$0 sm:$0xff]  ;;  %v381_v50 = vld [vmem:[%s765_s5 + $0x10] sm:$0xff]  ;;  %v382_v51 = vld [vmem:[%s765_s5 + $0x18] sm:$0xff] }
   0x7   :  { %604 = vmatpush3.bf16.msra.mxu1 %v601_v6  ;;  %v379_v47 = vld [vmem:[%s765_s5] sm:$0xff]  ;;  %v621_v52 = vpack.c.bf16 %v382_v51, %v381_v50 }
   0x8   :  { %557 = vmatmul.mubr.msk.f32.gmra.mrb[2].mxu0 %vm38_vm1, %v29_v7  ;;  %606 = vmatprep.subr.bf16.mxu1 %v605_v10  ;;  %v617_v49 = vpack.c.bf16 %v380_v48, %v379_v47  ;;  %v512_v53 = vld [vmem:[%s764_s4 + $0x1] ss:$0 sm:$0xff]  ;;  %v517_v6 = vld [vmem:[%s766_s6] ss:$0 sm:$0xff] }
   0x9   :  { %610 = vmatprep.subr.bf16.mxu0 %v609_v26 }
   0xa   :  { %612 = vmatpush3.bf16.msra.mxu0 %v609_v26 }
   0xb   :  { %608 = vmatpush3.bf16.msra.mxu1 %v605_v10  ;;  %614 = vmatprep.subr.bf16.mxu0 %v613_v29 }
   0xc   :  { %625 = vmatprep.subr.bf16.mxu1 %v617_v49 }
   0xe   :  { %616 = vmatpush3.bf16.msra.mxu0 %v613_v29 }
   0xf   :  { %618 = vmatprep.subr.bf16.mxu0 %v617_v49 }
  0xd7   :  { %v555_v12 = vpop.f32.mrb[0].mxu0 }
  0xd8   :  { %v127_v13 = vadd.f32 %v555_v12, %v496_v11  ;;  %v121_v14 = vpop.f32.mrb[1].mxu0 }
  0xd9   :  { %v122_v15 = vadd.f32 %v496_v11, %v121_v14 }
  0xda   :  { %v141_v18 = vmax.f32 %v127_v13, 0.0 }
  0xdb   :  { %v140_v16 = vmax.f32 %v122_v15, 0.0  ;;  %v558_v17 = vpop.f32.mrb[2].mxu0 }
  0xdc   :  { %v137_v19 = vadd.f32 %v558_v17, %v496_v11  ;;  %v131_v20 = vpop.f32.mrb[3].mxu0 }
  0xdd   :  { %v132_v21 = vadd.f32 %v496_v11, %v131_v20  ;;  %567 = vmatprep.mubr.msk.f32.mxu1 %vm155_vm2, %v140_v16 }
  0xde   :  { %568 = vmatmul.mubr.msk.f32.vlgmr.msra.gmra.mrb[0].mxu1 %vm155_vm2, %v141_v18  ;;  %v143_v23 = vmax.f32 %v137_v19, 0.0 }
  0xdf   :  { %v142_v22 = vmax.f32 %v132_v21, 0.0  ;;  %627 = vmatpush3.bf16.msra.mxu1 %v617_v49 }
  0xe0   :  { %626 = vmatprep.subr.bf16.mxu1 %v621_v52 }
  0xe1   :  { %570 = vmatprep.mubr.msk.f32.mxu1 %vm155_vm2, %v142_v22 }
  0xe2   :  { %571 = vmatmul.mubr.msk.f32.gmra.mrb[2].mxu1 %vm155_vm2, %v143_v23 }
  0xe3   :  { %628 = vmatpush3.bf16.msra.mxu1 %v621_v52 }
 0x1b1   :  { %v569_v31 = vpop.f32.mrb[0].mxu1 }
 0x1b2   :  { %v240_v32 = vadd.f32 %v569_v31, %v502_v30  ;;  %v234_v33 = vpop.f32.mrb[1].mxu1 }
 0x1b3   :  { %v235_v34 = vadd.f32 %v502_v30, %v234_v33 }
 0x1b4   :  { %v254_v35 = vmax.f32 %v240_v32, 0.0 }
 0x1b5   :  { %v253_v36 = vmax.f32 %v235_v34, 0.0  ;;  %v572_v37 = vpop.f32.mrb[2].mxu1 }
 0x1b6   :  { %v250_v38 = vadd.f32 %v572_v37, %v502_v30  ;;  %v244_v39 = vpop.f32.mrb[3].mxu1  ;;  %v258_v42 = vadd.f32 %v254_v35, %v141_v18 }
 0x1b7   :  { %v257_v40 = vadd.f32 %v253_v36, %v140_v16  ;;  %v245_v41 = vadd.f32 %v502_v30, %v244_v39 }
 0x1b8   :  { %v256_v43 = vmax.f32 %v250_v38, 0.0 }
 0x1b9   :  { %v255_v44 = vmax.f32 %v245_v41, 0.0  ;;  %581 = vmatprep.mubr.msk.f32.mxu0 %vm155_vm2, %v257_v40 }
 0x1ba   :  { %582 = vmatmul.mubr.msk.f32.vlgmr.msra.gmra.mrb[4].mxu0 %vm155_vm2, %v258_v42  ;;  %v260_v46 = vadd.f32 %v256_v43, %v143_v23 }
 0x1bb   :  { %v259_v45 = vadd.f32 %v255_v44, %v142_v22  ;;  %620 = vmatpush3.bf16.msra.mxu0 %v617_v49 }
 0x1bc   :  { %622 = vmatprep.subr.bf16.mxu0 %v621_v52 }
 0x1bd   :  { %584 = vmatprep.mubr.msk.f32.mxu0 %vm155_vm2, %v259_v45 }
 0x1be   :  { %585 = vmatmul.mubr.msk.f32.gmra.mrb[6].mxu0 %vm155_vm2, %v260_v46 }
 0x1bf   :  { %624 = vmatpush3.bf16.msra.mxu0 %v621_v52 }
 0x28d   :  { %v583_v54 = vpop.f32.mrb[4].mxu0 }
 0x28e   :  { %v358_v55 = vadd.f32 %v583_v54, %v512_v53  ;;  %v352_v56 = vpop.f32.mrb[5].mxu0 }
 0x28f   :  { %v353_v57 = vadd.f32 %v512_v53, %v352_v56 }
 0x290   :  { %v372_v58 = vmax.f32 %v358_v55, 0.0 }
 0x291   :  { %v371_v59 = vmax.f32 %v353_v57, 0.0  ;;  %v586_v60 = vpop.f32.mrb[6].mxu0 }
 0x292   :  { %v368_v61 = vadd.f32 %v586_v60, %v512_v53  ;;  %v362_v62 = vpop.f32.mrb[7].mxu0  ;;  %v376_v1 = vadd.f32 %v372_v58, %v258_v42 }
 0x293   :  { %v375_v63 = vadd.f32 %v371_v59, %v257_v40  ;;  %v363_v0 = vadd.f32 %v512_v53, %v362_v62 }
 0x294   :  { %v374_v2 = vmax.f32 %v368_v61, 0.0 }
 0x295   :  { %v373_v3 = vmax.f32 %v363_v0, 0.0  ;;  %595 = vmatprep.mubr.msk.f32.mxu0 %vm155_vm2, %v375_v63 }
 0x296   :  { %596 = vmatmul.mubr.msk.f32.vlgmr.msra.gmra.mrb[8].mxu0 %vm155_vm2, %v376_v1  ;;  %v378_v5 = vadd.f32 %v374_v2, %v260_v46 }
 0x297   :  { %v377_v4 = vadd.f32 %v373_v3, %v259_v45 }
 0x299   :  { %598 = vmatprep.mubr.msk.f32.mxu1 %vm155_vm2, %v377_v4 }
 0x29a   :  { %599 = vmatmul.mubr.msk.f32.vlgmr.msra.gmra.mrb[4].mxu1 %vm155_vm2, %v378_v5 }
 0x369   :  { %v597_v7 = vpop.f32.mrb[8].mxu0 }
 0x36a   :  { %v474_v8 = vadd.f32 %v597_v7, %v517_v6  ;;  %v468_v9 = vpop.f32.mrb[9].mxu0 }
 0x36b   :  { %v469_v10 = vadd.f32 %v517_v6, %v468_v9 }
 0x36c   :  { %489 = vst.msk [vmem:[%s767_s7 + $0x8] sm:$0xff] %vm487_vm3, %v474_v8 }
 0x36d   :  { %488 = vst.msk [vmem:[%s767_s7] sm:$0xff] %vm487_vm3, %v469_v10  ;;  %v600_v11 = vpop.f32.mrb[4].mxu1 }
 0x36e   :  { %v484_v12 = vadd.f32 %v600_v11, %v517_v6  ;;  %v478_v13 = vpop.f32.mrb[5].mxu1 }
 0x36f   :  { %v479_v14 = vadd.f32 %v517_v6, %v478_v13 }
 0x370   :  { %491 = vst.msk [vmem:[%s767_s7 + $0x18] sm:$0xff] %vm487_vm3, %v484_v12 }
 0x371   :  { %490 = vst.msk [vmem:[%s767_s7 + $0x10] sm:$0xff] %vm487_vm3, %v479_v14 }

// kernel: tpu_custom_call.1
= control target key start
LH: loop header
LB: loop body
LE: loop exit
PB: predicated region body
PF: predicated region fallthrough
CT: control target
= control target key end

     0   :  { %vm51_vm0 = vcmask 1043456   ;;  %vm38_vm1 = vcmask 31744   ;;  %vm155_vm2 = vcmask 261120   ;;  %vm487_vm3 = vcmask 64512   ;;  %s760_s1 = inlined_call_operand.vmem [shape: f32[4,32], index: 1, kind: input, shape index: {}]   ;;  %s761_s0 = inlined_call_operand.vmem [shape: f32[32,4], index: 0, kind: input, shape index: {}]   ;;  %s762_s3 = inlined_call_operand.vmem [shape: f32[2,32,32], index: 3, kind: input, shape index: {}]   ;;  %s763_s2 = inlined_call_operand.vmem [shape: f32[1,32], index: 2, kind: input, shape index: {}]   ;;  %s764_s4 = inlined_call_operand.vmem [shape: f32[2,1,32], index: 4, kind: input, shape index: {}]   ;;  %s765_s5 = inlined_call_operand.vmem [shape: f32[32,8], index: 5, kind: input, shape index: {}]   ;;  %s766_s6 = inlined_call_operand.vmem [shape: f32[1,8], index: 6, kind: input, shape index: {}]   ;;  %s767_s7 = inlined_call_operand.vmem [shape: f32[32,8], index: 7, kind: output, shape index: {}]  }
   0x1   :  { %v30_v0 = vld [vmem:[%s760_s1] sm:$0xf]  ;;  %v27_v2 = vld [vmem:[%s761_s0 + $0x8] sm:$0xff]  ;;  %v28_v3 = vld [vmem:[%s761_s0 + $0x10] sm:$0xff] }
   0x2   :  { %v26_v1 = vld [vmem:[%s761_s0] sm:$0xff]  ;;  %551 = vmatprep.subr.msk.mxu0 %vm51_vm0, %v30_v0  ;;  %v145_v5 = vld [vmem:[%s762_s3 + $0x8] sm:$0xff]  ;;  %v29_v7 = vld [vmem:[%s761_s0 + $0x18] sm:$0xff] }
   0x3   :  { %553 = vmatprep.mubr.msk.f32.mxu0 %vm38_vm1, %v26_v1  ;;  %v144_v4 = vld [vmem:[%s762_s3] sm:$0xff]  ;;  %552 = vmatpush3.msk.msra.mxu0 %vm51_vm0, %v30_v0  ;;  %v146_v8 = vld [vmem:[%s762_s3 + $0x10] sm:$0xff]  ;;  %v147_v9 = vld [vmem:[%s762_s3 + $0x18] sm:$0xff] }
   0x4   :  { %554 = vmatmul.mubr.msk.f32.vlgmr.msra.gmra.mrb[0].mxu0 %vm38_vm1, %v27_v2  ;;  %v601_v6 = vpack.c.bf16 %v145_v5, %v144_v4  ;;  %v605_v10 = vpack.c.bf16 %v147_v9, %v146_v8  ;;  %v496_v11 = vld [vmem:[%s763_s2] ss:$0 sm:$0xff]  ;;  %v508_v25 = vld [vmem:[%s762_s3 + $0x28] sm:$0xff]  ;;  %v509_v27 = vld [vmem:[%s762_s3 + $0x30] sm:$0xff] }
   0x5   :  { %556 = vmatprep.mubr.msk.f32.mxu0 %vm38_vm1, %v28_v3  ;;  %v507_v24 = vld [vmem:[%s762_s3 + $0x20] sm:$0xff]  ;;  %v510_v28 = vld [vmem:[%s762_s3 + $0x38] sm:$0xff]  ;;  %v380_v48 = vld [vmem:[%s765_s5 + $0x8] sm:$0xff] }
   0x6   :  { %602 = vmatprep.subr.bf16.mxu1 %v601_v6  ;;  %v609_v26 = vpack.c.bf16 %v508_v25, %v507_v24  ;;  %v613_v29 = vpack.c.bf16 %v510_v28, %v509_v27  ;;  %v502_v30 = vld [vmem:[%s764_s4] ss:$0 sm:$0xff]  ;;  %v381_v50 = vld [vmem:[%s765_s5 + $0x10] sm:$0xff]  ;;  %v382_v51 = vld [vmem:[%s765_s5 + $0x18] sm:$0xff] }
   0x7   :  { %604 = vmatpush3.bf16.msra.mxu1 %v601_v6  ;;  %v379_v47 = vld [vmem:[%s765_s5] sm:$0xff]  ;;  %v621_v52 = vpack.c.bf16 %v382_v51, %v381_v50 }
   0x8   :  { %557 = vmatmul.mubr.msk.f32.gmra.mrb[2].mxu0 %vm38_vm1, %v29_v7  ;;  %606 = vmatprep.subr.bf16.mxu1 %v605_v10  ;;  %v617_v49 = vpack.c.bf16 %v380_v48, %v379_v47  ;;  %v512_v53 = vld [vmem:[%s764_s4 + $0x1] ss:$0 sm:$0xff]  ;;  %v517_v6 = vld [vmem:[%s766_s6] ss:$0 sm:$0xff] }
   0x9   :  { %610 = vmatprep.subr.bf16.mxu0 %v609_v26 }
   0xa   :  { %612 = vmatpush3.bf16.msra.mxu0 %v609_v26 }
   0xb   :  { %608 = vmatpush3.bf16.msra.mxu1 %v605_v10  ;;  %614 = vmatprep.subr.bf16.mxu0 %v613_v29 }
   0xc   :  { %625 = vmatprep.subr.bf16.mxu1 %v617_v49 }
   0xe   :  { %616 = vmatpush3.bf16.msra.mxu0 %v613_v29 }
   0xf   :  { %618 = vmatprep.subr.bf16.mxu0 %v617_v49 }
  0xd7   :  { %v555_v12 = vpop.f32.mrb[0].mxu0 }
  0xd8   :  { %v127_v13 = vadd.f32 %v555_v12, %v496_v11  ;;  %v121_v14 = vpop.f32.mrb[1].mxu0 }
  0xd9   :  { %v122_v15 = vadd.f32 %v496_v11, %v121_v14 }
  0xda   :  { %v141_v18 = vmax.f32 %v127_v13, 0.0 }
  0xdb   :  { %v140_v16 = vmax.f32 %v122_v15, 0.0  ;;  %v558_v17 = vpop.f32.mrb[2].mxu0 }
  0xdc   :  { %v137_v19 = vadd.f32 %v558_v17, %v496_v11  ;;  %v131_v20 = vpop.f32.mrb[3].mxu0 }
  0xdd   :  { %v132_v21 = vadd.f32 %v496_v11, %v131_v20  ;;  %567 = vmatprep.mubr.msk.f32.mxu1 %vm155_vm2, %v140_v16 }
  0xde   :  { %568 = vmatmul.mubr.msk.f32.vlgmr.msra.gmra.mrb[0].mxu1 %vm155_vm2, %v141_v18  ;;  %v143_v23 = vmax.f32 %v137_v19, 0.0 }
  0xdf   :  { %v142_v22 = vmax.f32 %v132_v21, 0.0  ;;  %627 = vmatpush3.bf16.msra.mxu1 %v617_v49 }
  0xe0   :  { %626 = vmatprep.subr.bf16.mxu1 %v621_v52 }
  0xe1   :  { %570 = vmatprep.mubr.msk.f32.mxu1 %vm155_vm2, %v142_v22 }
  0xe2   :  { %571 = vmatmul.mubr.msk.f32.gmra.mrb[2].mxu1 %vm155_vm2, %v143_v23 }
  0xe3   :  { %628 = vmatpush3.bf16.msra.mxu1 %v621_v52 }
 0x1b1   :  { %v569_v31 = vpop.f32.mrb[0].mxu1 }
 0x1b2   :  { %v240_v32 = vadd.f32 %v569_v31, %v502_v30  ;;  %v234_v33 = vpop.f32.mrb[1].mxu1 }
 0x1b3   :  { %v235_v34 = vadd.f32 %v502_v30, %v234_v33 }
 0x1b4   :  { %v254_v35 = vmax.f32 %v240_v32, 0.0 }
 0x1b5   :  { %v253_v36 = vmax.f32 %v235_v34, 0.0  ;;  %v572_v37 = vpop.f32.mrb[2].mxu1 }
 0x1b6   :  { %v250_v38 = vadd.f32 %v572_v37, %v502_v30  ;;  %v244_v39 = vpop.f32.mrb[3].mxu1  ;;  %v258_v42 = vadd.f32 %v254_v35, %v141_v18 }
 0x1b7   :  { %v257_v40 = vadd.f32 %v253_v36, %v140_v16  ;;  %v245_v41 = vadd.f32 %v502_v30, %v244_v39 }
 0x1b8   :  { %v256_v43 = vmax.f32 %v250_v38, 0.0 }
 0x1b9   :  { %v255_v44 = vmax.f32 %v245_v41, 0.0  ;;  %581 = vmatprep.mubr.msk.f32.mxu0 %vm155_vm2, %v257_v40 }
 0x1ba   :  { %582 = vmatmul.mubr.msk.f32.vlgmr.msra.gmra.mrb[4].mxu0 %vm155_vm2, %v258_v42  ;;  %v260_v46 = vadd.f32 %v256_v43, %v143_v23 }
 0x1bb   :  { %v259_v45 = vadd.f32 %v255_v44, %v142_v22  ;;  %620 = vmatpush3.bf16.msra.mxu0 %v617_v49 }
 0x1bc   :  { %622 = vmatprep.subr.bf16.mxu0 %v621_v52 }
 0x1bd   :  { %584 = vmatprep.mubr.msk.f32.mxu0 %vm155_vm2, %v259_v45 }
 0x1be   :  { %585 = vmatmul.mubr.msk.f32.gmra.mrb[6].mxu0 %vm155_vm2, %v260_v46 }
 0x1bf   :  { %624 = vmatpush3.bf16.msra.mxu0 %v621_v52 }
 0x28d   :  { %v583_v54 = vpop.f32.mrb[4].mxu0 }
 0x28e   :  { %v358_v55 = vadd.f32 %v583_v54, %v512_v53  ;;  %v352_v56 = vpop.f32.mrb[5].mxu0 }
 0x28f   :  { %v353_v57 = vadd.f32 %v512_v53, %v352_v56 }
 0x290   :  { %v372_v58 = vmax.f32 %v358_v55, 0.0 }
 0x291   :  { %v371_v59 = vmax.f32 %v353_v57, 0.0  ;;  %v586_v60 = vpop.f32.mrb[6].mxu0 }
 0x292   :  { %v368_v61 = vadd.f32 %v586_v60, %v512_v53  ;;  %v362_v62 = vpop.f32.mrb[7].mxu0  ;;  %v376_v1 = vadd.f32 %v372_v58, %v258_v42 }
 0x293   :  { %v375_v63 = vadd.f32 %v371_v59, %v257_v40  ;;  %v363_v0 = vadd.f32 %v512_v53, %v362_v62 }
 0x294   :  { %v374_v2 = vmax.f32 %v368_v61, 0.0 }
 0x295   :  { %v373_v3 = vmax.f32 %v363_v0, 0.0  ;;  %595 = vmatprep.mubr.msk.f32.mxu0 %vm155_vm2, %v375_v63 }
 0x296   :  { %596 = vmatmul.mubr.msk.f32.vlgmr.msra.gmra.mrb[8].mxu0 %vm155_vm2, %v376_v1  ;;  %v378_v5 = vadd.f32 %v374_v2, %v260_v46 }
 0x297   :  { %v377_v4 = vadd.f32 %v373_v3, %v259_v45 }
 0x299   :  { %598 = vmatprep.mubr.msk.f32.mxu1 %vm155_vm2, %v377_v4 }
 0x29a   :  { %599 = vmatmul.mubr.msk.f32.vlgmr.msra.gmra.mrb[4].mxu1 %vm155_vm2, %v378_v5 }
 0x369   :  { %v597_v7 = vpop.f32.mrb[8].mxu0 }
 0x36a   :  { %v474_v8 = vadd.f32 %v597_v7, %v517_v6  ;;  %v468_v9 = vpop.f32.mrb[9].mxu0 }
 0x36b   :  { %v469_v10 = vadd.f32 %v517_v6, %v468_v9 }
 0x36c   :  { %489 = vst.msk [vmem:[%s767_s7 + $0x8] sm:$0xff] %vm487_vm3, %v474_v8 }
 0x36d   :  { %488 = vst.msk [vmem:[%s767_s7] sm:$0xff] %vm487_vm3, %v469_v10  ;;  %v600_v11 = vpop.f32.mrb[4].mxu1 }
 0x36e   :  { %v484_v12 = vadd.f32 %v600_v11, %v517_v6  ;;  %v478_v13 = vpop.f32.mrb[5].mxu1 }
 0x36f   :  { %v479_v14 = vadd.f32 %v517_v6, %v478_v13 }
 0x370   :  { %491 = vst.msk [vmem:[%s767_s7 + $0x18] sm:$0xff] %vm487_vm3, %v484_v12 }
 0x371   :  { %490 = vst.msk [vmem:[%s767_s7 + $0x10] sm:$0xff] %vm487_vm3, %v479_v14 }

</bundles_post_ra>
